<compile_context>
chip_gen: v6e
topology: v6e:2x2x1
jax: 0.10.0
libtpu: 0.0.40
codegen_flags: <defaults>
</compile_context>

<pallas_src>
import jax
import jax.numpy as jnp
from jax.experimental import pallas as pl
from jax.experimental.pallas import tpu as pltpu

LANE = 128


def _round_up(x, m):
    return (x + m - 1) // m * m


def _vmem_capacity_bytes():
    """Per-core VMEM capacity; conservative default if unqueryable."""
    try:
        info = pltpu.get_tpu_info()
        cap = getattr(info, "vmem_capacity_bytes", None)
        if cap:
            return int(cap)
    except Exception:
        pass
    return 64 * 1024 * 1024  # v7x per-core VMEM (smallest of v5e/v6e/v7x)


def _pick_tiles(n, fp, tile_budget, a_bytes):
    """(tm, tk): row tile / contraction tile for the A_hat blocks."""
    if n <= 1024:
        # Small graph: single K block, single (or few) row blocks.
        return _round_up(n, 8), _round_up(n, LANE)
    tm = 512  # MXU-friendly row tile (2x256^2 MXU on v6e/v7x, 4x128^2 on v5e)
    # Fixed VMEM: double-buffered output + f32 accumulator + bias.
    fixed = 2 * tm * fp * 4 + tm * fp * 4 + 2 * fp * 4
    avail = max(tile_budget - fixed, 4 * 1024 * 1024)
    # Per contraction column: double-buffered A tile + double-buffered xw tile.
    per_tk = 2 * tm * a_bytes + 2 * fp * a_bytes
    tk = (avail // per_tk) // LANE * LANE
    tk = max(512, min(tk, _round_up(n, LANE)))
    return tm, tk


def gcn_kernel(a_ref, xw_ref, b_ref, o_ref, acc_ref):
    """One (row-tile, k-tile) step of out = A_hat @ (x @ W^T) + b.

    a_ref  : [tm, tk]  bf16/f32  normalized-adjacency tile (streamed)
    xw_ref : [tk, fp]  bf16/f32  precomputed x @ W^T tile (streamed)
    b_ref  : [1,  fp]  f32       bias (resident)
    o_ref  : [tm, fp]  f32       output (written on the last k step)
    acc_ref: [tm, fp]  f32       VMEM scratch accumulator
    """
    k = pl.program_id(1)

    @pl.when(k == 0)
    def _init():
        acc_ref[...] = jnp.zeros_like(acc_ref)

    # Native bf16 x bf16 -> f32 MXU path (no f32 upcast of the A tile).
    acc_ref[...] += jnp.dot(a_ref[...], xw_ref[...],
                            preferred_element_type=jnp.float32)

    @pl.when(k == pl.num_programs(1) - 1)
    def _finalize():
        o_ref[...] = acc_ref[...] + b_ref[...]


def build_normalized_adjacency(edge_index, num_nodes, *, num_rows=None,
                               num_cols=None, dtype=jnp.float32):
    """Dense D^{-1/2}(A + I)D^{-1/2} matching PyG gcn_norm (source_to_target).

    Built directly at the (optionally padded) shape and in the streaming dtype
    so no extra O(N^2) cast / pad passes are needed before the kernel.
    Padding rows / columns stay zero.
    """
    num_rows = num_nodes if num_rows is None else num_rows
    num_cols = num_nodes if num_cols is None else num_cols
    src, dst = edge_index[0], edge_index[1]
    loop = jnp.arange(num_nodes, dtype=src.dtype)
    row = jnp.concatenate([src, loop])   # message sender (j)
    col = jnp.concatenate([dst, loop])   # target / aggregator (i)
    ones = jnp.ones(row.shape[0], dtype=jnp.float32)
    deg = jnp.zeros((num_nodes,), jnp.float32).at[col].add(ones)
    deg_inv_sqrt = jnp.where(deg > 0, 1.0 / jnp.sqrt(deg), 0.0)
    norm = (deg_inv_sqrt[row] * deg_inv_sqrt[col]).astype(dtype)
    # out_i = sum over edges (j -> i) of norm * x'_j  =>  A_hat[i, j]
    a_hat = jnp.zeros((num_rows, num_cols), dtype).at[col, row].add(norm)
    return a_hat


def gcn_forward(edge_index, x, weight, bias, *, adjacency_dtype=jnp.bfloat16):
    """GCNConv forward: D^{-1/2}(A+I)D^{-1/2} @ (x @ W^T) + b.

    edge_index: [2, E] int, x: [N, F_in], weight: [F_out, F_in], bias: [F_out].
    Returns [N, F_out] float32.
    """
    n, _ = x.shape
    f_out = weight.shape[0]
    a_bytes = jnp.dtype(adjacency_dtype).itemsize

    # Lane-dense (128-wide) output only when N is large enough that the padded
    # f32 writeback is negligible next to streaming A_hat; otherwise keep the
    # output narrow (f_out lanes) to avoid dominating HBM traffic.
    fp = _round_up(f_out, LANE) if n >= 2048 else f_out

    cap = _vmem_capacity_bytes()
    vmem_limit = int(cap * 0.75)      # leave compiler headroom (esp. on v7x)
    tile_budget = int(cap * 0.60)
    tm, tk = _pick_tiles(n, fp, tile_budget, a_bytes)
    n_pad_r = _round_up(n, tm)
    n_pad_c = _round_up(n, tk)

    # Normalized adjacency, built once at the padded shape in the streaming
    # dtype (single scatter pass; no separate astype / jnp.pad passes).
    a_hat = build_normalized_adjacency(edge_index, n, num_rows=n_pad_r,
                                       num_cols=n_pad_c, dtype=adjacency_dtype)

    # Grid-invariant feature transform, hoisted out of the kernel, padded to
    # the contraction / lane-padded shape, cast once to the MXU dtype.
    xw = jnp.zeros((n_pad_c, fp), adjacency_dtype).at[:n, :f_out].set(
        (x @ weight.T).astype(adjacency_dtype))
    b_p = jnp.zeros((1, fp), jnp.float32).at[:, :f_out].set(
        bias.astype(jnp.float32)[None, :])

    out_padded = pl.pallas_call(
        gcn_kernel,
        out_shape=jax.ShapeDtypeStruct((n_pad_r, fp), jnp.float32),
        grid=(n_pad_r // tm, n_pad_c // tk),
        in_specs=[
            pl.BlockSpec((tm, tk), lambda i, k: (i, k)),   # A_hat tile
            pl.BlockSpec((tk, fp), lambda i, k: (k, 0)),   # x @ W^T tile
            pl.BlockSpec((1, fp), lambda i, k: (0, 0)),    # bias (resident)
        ],
        out_specs=pl.BlockSpec((tm, fp), lambda i, k: (i, 0)),
        scratch_shapes=[pltpu.VMEM((tm, fp), jnp.float32)],
        compiler_params=pltpu.CompilerParams(
            dimension_semantics=("parallel", "arbitrary"),  # rows across TCs
            vmem_limit_bytes=vmem_limit,
        ),
    )(a_hat, xw, b_p)

    return out_padded[:n, :f_out]


if __name__ == "__main__":
    key = jax.random.PRNGKey(0)
    k_edges, k_w, k_b = jax.random.split(key, 3)

    # Synthetic graph mirroring the original script: N nodes = number of edges,
    # node feature x[i] = [i].
    num_edges = 16
    num_nodes = num_edges
    src = jax.random.randint(k_edges, (num_edges,), 0, num_nodes, dtype=jnp.int32)
    dst = jax.random.randint(jax.random.fold_in(k_edges, 1), (num_edges,), 0,
                             num_nodes, dtype=jnp.int32)
    edge_index = jnp.stack([src, dst], axis=0)                   # [2, E]
    x = jnp.arange(num_nodes, dtype=jnp.float32)[:, None]        # [N, 1]

    # GCNConv(1, 2) parameters, deterministic init.
    weight = jax.random.normal(k_w, (2, 1), dtype=jnp.float32)   # [F_out, F_in]
    bias = jax.random.normal(k_b, (2,), dtype=jnp.float32)       # [F_out]

    out = jax.jit(gcn_forward)(edge_index, x, weight, bias)
    out = jax.block_until_ready(out)
    assert out.shape == (num_nodes, 2)

    # Tight check: reference using the same bf16-rounded A_hat and x@W^T the
    # kernel streams (only accumulation order differs).
    a_bf = build_normalized_adjacency(
        edge_index, num_nodes, dtype=jnp.bfloat16).astype(jnp.float32)
    xw_bf = (x @ weight.T).astype(jnp.bfloat16).astype(jnp.float32)
    ref = a_bf @ xw_bf + bias[None, :]
    assert jnp.allclose(out, ref, atol=1e-4, rtol=1e-4)

    # Loose sanity check against full-f32 math (difference = bf16 rounding of
    # the streamed operands -- the documented precision tradeoff).
    a_f32 = build_normalized_adjacency(edge_index, num_nodes, dtype=jnp.float32)
    ref_f32 = a_f32 @ (x @ weight.T) + bias[None, :]
    assert jnp.allclose(out, ref_f32, atol=5e-1, rtol=5e-2)

    print("KERNEL_OK")
</pallas_src>

<mosaic_0001>
module attributes {stable_mosaic.version = 11 : i64} {
  func.func private @main(%arg0: i32) attributes {dimension_semantics = [#tpu.dimension_semantics<core_parallel>], iteration_bounds = array<i64: 2>, tpu.core_type = #tpu.core_type<sc_scalar_subcore>, window_params = []} {
    return
  }
}

module attributes {stable_mosaic.version = 11 : i64} {
  func.func private @main(%arg0: i32) attributes {dimension_semantics = [#tpu.dimension_semantics<core_parallel>], iteration_bounds = array<i64: 2>, tpu.core_type = #tpu.core_type<sc_scalar_subcore>, window_params = []} {
    return
  }
}

module attributes {stable_mosaic.version = 11 : i64} {
  func.func @gcn_kernel(%arg0: i32, %arg1: i32, %arg2: memref<16x128xbf16, #tpu.memory_space<vmem>>, %arg3: memref<128x2xbf16, #tpu.memory_space<vmem>>, %arg4: memref<1x2xf32, #tpu.memory_space<vmem>>, %arg5: memref<16x2xf32, #tpu.memory_space<vmem>>, %arg6: memref<16x2xf32, #tpu.memory_space<vmem>>) attributes {dimension_semantics = [#tpu.dimension_semantics<parallel>, #tpu.dimension_semantics<arbitrary>], iteration_bounds = array<i64: 1, 1>, scalar_prefetch = 0 : i64, scratch_operands = 1 : i64, tpu.core_type = #tpu.core_type<tc>, window_params = [{transform_indices = @transform_0, window_bounds = array<i64: 16, 128>}, {transform_indices = @transform_1, window_bounds = array<i64: 128, 2>}, {pipeline_mode = #tpu.pipeline_mode<synchronous>, transform_indices = @transform_2, window_bounds = array<i64: 1, 2>}, {transform_indices = @transform_3, window_bounds = array<i64: 16, 2>}]} {
    %c0_i32 = arith.constant 0 : i32
    %0 = arith.cmpi eq, %arg1, %c0_i32 : i32
    %1 = arith.extui %0 : i1 to i32
    %c0_i32_0 = arith.constant 0 : i32
    %2 = arith.cmpi ne, %1, %c0_i32_0 : i32
    scf.if %2 {
      %cst_10 = arith.constant 0.000000e+00 : f32
      %12 = vector.broadcast %cst_10 : f32 to vector<16x2xf32>
      %c0_11 = arith.constant 0 : index
      %c0_12 = arith.constant 0 : index
      %13 = vector.load %arg6[%c0_11, %c0_12] : memref<16x2xf32, #tpu.memory_space<vmem>>, vector<16x2xf32>
      tpu.vector_store %arg6[%c0_11, %c0_12], %12 {strides = array<i32>} : memref<16x2xf32, #tpu.memory_space<vmem>>, vector<16x2xf32>,
    } else {
    }
    %c0 = arith.constant 0 : index
    %c0_1 = arith.constant 0 : index
    %3 = vector.load %arg6[%c0, %c0_1] : memref<16x2xf32, #tpu.memory_space<vmem>>, vector<16x2xf32>
    %c0_2 = arith.constant 0 : index
    %c0_3 = arith.constant 0 : index
    %4 = vector.load %arg2[%c0_2, %c0_3] : memref<16x128xbf16, #tpu.memory_space<vmem>>, vector<16x128xbf16>
    %c0_4 = arith.constant 0 : index
    %c0_5 = arith.constant 0 : index
    %5 = vector.load %arg3[%c0_4, %c0_5] : memref<128x2xbf16, #tpu.memory_space<vmem>>, vector<128x2xbf16>
    %cst = arith.constant dense<0.000000e+00> : vector<16x2xf32>
    %6 = tpu.matmul %4, %5, %cst {dimension_numbers = #tpu.dot_dimension_numbers<[1], [0], [0], [1], [0, 0, 1, 1], [], []>} : vector<16x128xbf16>, vector<128x2xbf16>, vector<16x2xf32> -> vector<16x2xf32>
    %7 = arith.addf %3, %6 : vector<16x2xf32>
    %c0_6 = arith.constant 0 : index
    %c0_7 = arith.constant 0 : index
    %8 = vector.load %arg6[%c0_6, %c0_7] : memref<16x2xf32, #tpu.memory_space<vmem>>, vector<16x2xf32>
    tpu.vector_store %arg6[%c0_6, %c0_7], %7 {strides = array<i32>} : memref<16x2xf32, #tpu.memory_space<vmem>>, vector<16x2xf32>,
    %c0_i32_8 = arith.constant 0 : i32
    %9 = arith.cmpi eq, %arg1, %c0_i32_8 : i32
    %10 = arith.extui %9 : i1 to i32
    %c0_i32_9 = arith.constant 0 : i32
    %11 = arith.cmpi ne, %10, %c0_i32_9 : i32
    scf.if %11 {
      %c0_10 = arith.constant 0 : index
      %c0_11 = arith.constant 0 : index
      %12 = vector.load %arg6[%c0_10, %c0_11] : memref<16x2xf32, #tpu.memory_space<vmem>>, vector<16x2xf32>
      %c0_12 = arith.constant 0 : index
      %c0_13 = arith.constant 0 : index
      %13 = vector.load %arg4[%c0_12, %c0_13] : memref<1x2xf32, #tpu.memory_space<vmem>>, vector<1x2xf32>
      %14 = vector.broadcast %13 : vector<1x2xf32> to vector<16x2xf32>
      %15 = arith.addf %12, %14 : vector<16x2xf32>
      %c0_14 = arith.constant 0 : index
      %c0_15 = arith.constant 0 : index
      %16 = vector.load %arg5[%c0_14, %c0_15] : memref<16x2xf32, #tpu.memory_space<vmem>>, vector<16x2xf32>
      tpu.vector_store %arg5[%c0_14, %c0_15], %15 {strides = array<i32>} : memref<16x2xf32, #tpu.memory_space<vmem>>, vector<16x2xf32>,
    } else {
    }
    return
  }
  func.func @transform_0(%arg0: i32, %arg1: i32) -> (i32, i32) {
    %c0_i32 = arith.constant 0 : i32
    return %arg0, %arg1 : i32, i32
  }
  func.func @transform_1(%arg0: i32, %arg1: i32) -> (i32, i32) {
    %c0_i32 = arith.constant 0 : i32
    %c0_i32_0 = arith.constant 0 : i32
    return %arg1, %c0_i32 : i32, i32
  }
  func.func @transform_2(%arg0: i32, %arg1: i32) -> (i32, i32) {
    %c0_i32 = arith.constant 0 : i32
    %c0_i32_0 = arith.constant 0 : i32
    %c0_i32_1 = arith.constant 0 : i32
    return %c0_i32, %c0_i32_0 : i32, i32
  }
  func.func @transform_3(%arg0: i32, %arg1: i32) -> (i32, i32) {
    %c0_i32 = arith.constant 0 : i32
    %c0_i32_0 = arith.constant 0 : i32
    return %arg0, %c0_i32 : i32, i32
  }
}

</mosaic_0001>

<bundles_post_ra>
// kernel: gcn_forward.1
= control target key start
LH: loop header
LB: loop body
LE: loop exit
PB: predicated region body
PF: predicated region fallthrough
CT: control target
= control target key end

     0   :  { %vm19_vm0 = vcmask 15360   ;;  %v212_v0 = vmov 0.0   ;;  %vm213_vm1 = vmmov 0   ;;  %s276_s1 = inlined_call_operand.vmem [shape: bf16[128,2], index: 1, kind: input, shape index: {}]   ;;  %s277_s0 = inlined_call_operand.vmem [shape: bf16[16,128], index: 0, kind: input, shape index: {}]   ;;  %s278_s2 = inlined_call_operand.vmem [shape: f32[1,2], index: 2, kind: input, shape index: {}]   ;;  %s279_s3 = inlined_call_operand.vmem [shape: f32[16,2], index: 3, kind: output, shape index: {}]  }
   0x1   :  { %181 = vmatprep.subr.bf16.mxu0 %v212_v0  ;;  %v203_v1 = vld [vmem:[%s276_s1 + $0x38] sm:$0xff]   ;;  %197 = vmatprep.mubr.msk.bf16.mxu0 %vm213_vm1, %v212_v0  ;;  %20 = vst.msk [vmem:[#allocation2] sm:$0xff] %vm19_vm0, %v212_v0  ;;  %21 = vst.msk [vmem:[#allocation2 + $0x8] sm:$0xff] %vm19_vm0, %v212_v0  ;;  %v204_v2 = vld [vmem:[%s276_s1 + $0x30] sm:$0xff]  }
   0x2   :  { %182 = vmatpush3.bf16.msra.mxu0 %v203_v1  ;;  %v205_v3 = vld [vmem:[%s276_s1 + $0x28] sm:$0xff]   ;;  %v206_v4 = vld [vmem:[%s276_s1 + $0x20] sm:$0xff]   ;;  %v207_v5 = vld [vmem:[%s276_s1 + $0x18] sm:$0xff]  }
   0x3   :  { %183 = vmatprep.subr.bf16.mxu0 %v212_v0  ;;  %v208_v6 = vld [vmem:[%s276_s1 + $0x10] sm:$0xff]   ;;  %v209_v7 = vld [vmem:[%s276_s1 + $0x8] sm:$0xff]   ;;  %v210_v8 = vld [vmem:[%s276_s1] sm:$0xff]  }
   0x4   :  { %v211_v9 = vld [vmem:[%s277_s0] sm:$0xff]  }
   0x5   :  { %v171_v18 = vld [vmem:[%s278_s2] ss:$0 sm:$0xff] }
   0x6   :  { %184 = vmatpush3.bf16.msra.mxu0 %v204_v2 }
   0x7   :  { %185 = vmatprep.subr.bf16.mxu0 %v212_v0 }
   0x8   :  { %v22_v10 = vld [vmem:[#allocation2] sm:$0xff]  ;;  %v23_v14 = vld [vmem:[#allocation2 + $0x8] sm:$0xff] }
   0xa   :  { %186 = vmatpush3.bf16.msra.mxu0 %v205_v3 }
   0xb   :  { %187 = vmatprep.subr.bf16.mxu0 %v212_v0 }
   0xe   :  { %188 = vmatpush3.bf16.msra.mxu0 %v206_v4 }
   0xf   :  { %189 = vmatprep.subr.bf16.mxu0 %v212_v0 }
  0x12   :  { %190 = vmatpush3.bf16.msra.mxu0 %v207_v5 }
  0x13   :  { %191 = vmatprep.subr.bf16.mxu0 %v212_v0 }
  0x16   :  { %192 = vmatpush3.bf16.msra.mxu0 %v208_v6 }
  0x17   :  { %193 = vmatprep.subr.bf16.mxu0 %v212_v0 }
  0x1a   :  { %194 = vmatpush3.bf16.msra.mxu0 %v209_v7 }
  0x1b   :  { %195 = vmatprep.subr.bf16.mxu0 %v212_v0 }
  0x1e   :  { %196 = vmatpush3.bf16.msra.mxu0 %v210_v8 }
  0x21   :  { %198 = vmatmul.mubr.bf16.vlgmr.msra.gmra.mxu0 %v211_v9 }
  0xe1   :  { %v130_v11 = vpop.f32.mrf.mxu0 }
  0xe2   :  { %v137_v12 = vadd.f32 %v130_v11, %v22_v10 }
  0xe3   :  { %v199_v13 = vpop.f32.mrf.mxu0 }
  0xe4   :  { %140 = vst.msk [vmem:[#allocation2] sm:$0xff] %vm19_vm0, %v137_v12 }
  0xe5   :  { %v133_v15 = vpop.f32.mrf.mxu0 }
  0xe6   :  { %v138_v16 = vadd.f32 %v133_v15, %v23_v14 }
  0xe7   :  { %v200_v17 = vpop.f32.mrf.mxu0 }
  0xe8   :  { %141 = vst.msk [vmem:[#allocation2 + $0x8] sm:$0xff] %vm19_vm0, %v138_v16 }
  0xeb   :  { %v145_v19 = vld [vmem:[#allocation2] sm:$0xff] }
  0xec   :  { %v154_v20 = vadd.f32 %v171_v18, %v145_v19 }
  0xee   :  { %156 = vst.msk [vmem:[%s279_s3] sm:$0xff] %vm19_vm0, %v154_v20 }
  0xef   :  { %v146_v21 = vld [vmem:[#allocation2 + $0x8] sm:$0xff] }
  0xf0   :  { %v155_v22 = vadd.f32 %v171_v18, %v146_v21 }
  0xf2   :  { %157 = vst.msk [vmem:[%s279_s3 + $0x8] sm:$0xff] %vm19_vm0, %v155_v22 }

</bundles_post_ra>
